<compile_context>
chip_gen: v6e
topology: v6e:2x2x1
jax: 0.10.0
libtpu: 0.0.40
codegen_flags: <defaults>
</compile_context>

<pallas_src>
import functools
import math

import jax
import jax.numpy as jnp
from jax import lax
from jax.experimental import pallas as pl
from jax.experimental.pallas import tpu as pltpu


def _round_up(n, m):
    return ((n + m - 1) // m) * m


def _dqn_kernel(x_ref, emb_ref, w1e_ref, w1r_ref, b1_ref,
                w2_ref, b2_ref, w3_ref, b3_ref, o_ref):
    """Fused embedding-gather + 3-layer MLP for one batch tile.

    x_ref   : (TB, input_size) f32   column 0 = epoch index, rest = features
    emb_ref : (NUM_EMB_PAD, E) bf16  zero-padded embedding table
    w1e_ref : (E, H2) bf16,  w1r_ref: (input_size-1, H2) bf16
    w2_ref  : (H2, H3) bf16, w3_ref : (H3, OUT_PAD) bf16
    b*_ref  : (1, H) f32
    o_ref   : (TB, OUT_PAD) f32
    """
    x = x_ref[...]
    tb = x.shape[0]
    idx = x[:, :1].astype(jnp.int32)              # (TB, 1) epoch indices
    rest = x[:, 1:].astype(jnp.bfloat16)          # (TB, input_size-1)

    # Embedding gather as a one-hot matmul on the MXU (one-hot is exact 0/1).
    n_emb = emb_ref.shape[0]
    iota = lax.broadcasted_iota(jnp.int32, (tb, n_emb), 1)
    onehot = (iota == idx).astype(jnp.bfloat16)   # (TB, n_emb)
    emb_rows = jnp.dot(onehot, emb_ref[...],
                       preferred_element_type=jnp.float32)       # (TB, E) f32

    # Layer 1: [emb_rows | rest] @ W1 + b1 == emb_rows@W1[:E] + rest@W1[E:] + b1
    h = (jnp.dot(emb_rows.astype(jnp.bfloat16), w1e_ref[...],
                 preferred_element_type=jnp.float32)
         + jnp.dot(rest, w1r_ref[...], preferred_element_type=jnp.float32)
         + b1_ref[...])
    h = jnp.maximum(h, 0.0)

    # Layer 2
    h = jnp.dot(h.astype(jnp.bfloat16), w2_ref[...],
                preferred_element_type=jnp.float32) + b2_ref[...]
    h = jnp.maximum(h, 0.0)

    # Layer 3 (output lanes padded to a 128 multiple -> unmasked stores)
    out = jnp.dot(h.astype(jnp.bfloat16), w3_ref[...],
                  preferred_element_type=jnp.float32) + b3_ref[...]
    o_ref[...] = out.astype(o_ref.dtype)


@functools.partial(jax.jit, static_argnames=("output_size", "block_b"))
def dqn_forward(x, emb, w1e, w1r, b1, w2, b2, w3, b3, *,
                output_size, block_b=512):
    """x: (B, input_size) f32 -> (B, output_size) f32."""
    B, in_size = x.shape
    out_pad = w3.shape[1]
    tb = min(block_b, B)
    grid = (pl.cdiv(B, tb),)

    def param_spec(arr):
        return pl.BlockSpec(arr.shape, lambda i: (0, 0))  # VMEM-resident

    out = pl.pallas_call(
        _dqn_kernel,
        out_shape=jax.ShapeDtypeStruct((B, out_pad), jnp.float32),
        grid=grid,
        in_specs=[
            pl.BlockSpec((tb, in_size), lambda i: (i, 0)),
            param_spec(emb), param_spec(w1e), param_spec(w1r), param_spec(b1),
            param_spec(w2), param_spec(b2), param_spec(w3), param_spec(b3),
        ],
        out_specs=pl.BlockSpec((tb, out_pad), lambda i: (i, 0)),
        compiler_params=pltpu.CompilerParams(
            dimension_semantics=("parallel",)),
    )(x, emb, w1e, w1r, b1, w2, b2, w3, b3)
    return out[:, :output_size]


class DQNPallas:
    """Deterministically-initialized JAX/Pallas port of RH_DQN.DQN."""

    NUM_EMBEDDINGS = 361  # nn.Embedding(361, embedding_size)

    def __init__(self, input_size, embedding_size, hidden_size_1,
                 hidden_size_2, hidden_size_3, output_size=25, seed=0):
        assert hidden_size_1 == input_size - 1 + embedding_size
        self.input_size = input_size
        self.embedding_size = embedding_size
        self.output_size = output_size

        key = jax.random.PRNGKey(seed)
        ks = jax.random.split(key, 7)

        # Embedding ~ N(0,1) like nn.Embedding default init; zero-pad rows to a
        # multiple of 128 so the one-hot gather matmul needs no K masking.
        n_emb_pad = _round_up(self.NUM_EMBEDDINGS, 128)
        emb = jax.random.normal(
            ks[0], (self.NUM_EMBEDDINGS, embedding_size), jnp.float32)
        emb = jnp.pad(emb, ((0, n_emb_pad - self.NUM_EMBEDDINGS), (0, 0)))
        self.emb = emb.astype(jnp.bfloat16)

        def linear_init(kw, kb, fan_in, fan_out):
            bound = 1.0 / math.sqrt(fan_in)
            # stored as (in, out) so the kernel does x @ W + b
            w = jax.random.uniform(kw, (fan_in, fan_out), jnp.float32, -bound, bound)
            b = jax.random.uniform(kb, (1, fan_out), jnp.float32, -bound, bound)
            return w, b

        w1, b1 = linear_init(ks[1], ks[2], hidden_size_1, hidden_size_2)
        w2, b2 = linear_init(ks[3], ks[4], hidden_size_2, hidden_size_3)
        w3, b3 = linear_init(ks[5], ks[6], hidden_size_3, output_size)

        # Split W1 for (embedded || raw) features -> no in-kernel concat.
        self.w1e = w1[:embedding_size].astype(jnp.bfloat16)
        self.w1r = w1[embedding_size:].astype(jnp.bfloat16)
        self.b1 = b1
        self.w2 = w2.astype(jnp.bfloat16)
        self.b2 = b2
        # Pad output dim to a 128-lane slab (unmasked vst stores).
        out_pad = _round_up(output_size, 128)
        self.w3 = jnp.pad(w3, ((0, 0), (0, out_pad - output_size))).astype(jnp.bfloat16)
        self.b3 = jnp.pad(b3, ((0, 0), (0, out_pad - output_size)))

    def __call__(self, x):
        # x: (B, input_size) or (input_size,) -- same semantics as the torch module.
        # TODO(synk): out-of-range epoch indices produce a zero embedding here
        # (one-hot has no hit) instead of raising like torch nn.Embedding.
        squeeze = x.ndim == 1
        if squeeze:
            x = x[None, :]
        out = dqn_forward(x.astype(jnp.float32), self.emb, self.w1e, self.w1r,
                          self.b1, self.w2, self.b2, self.w3, self.b3,
                          output_size=self.output_size)
        return out[0] if squeeze else out


if __name__ == "__main__":
    # Small shapes consistent with the module's constraint:
    #   hidden_size_1 = input_size - 1 + embedding_size
    input_size, embedding_size = 9, 24
    hidden_size_1 = input_size - 1 + embedding_size   # 32
    hidden_size_2, hidden_size_3, output_size = 32, 32, 25
    batch = 8

    model = DQNPallas(input_size, embedding_size, hidden_size_1,
                      hidden_size_2, hidden_size_3, output_size, seed=0)

    key = jax.random.PRNGKey(0)
    k_idx, k_feat = jax.random.split(key)
    epoch_idx = jax.random.randint(k_idx, (batch,), 0, 361).astype(jnp.float32)
    rest = jax.random.normal(k_feat, (batch, input_size - 1), jnp.float32)
    x = jnp.concatenate([epoch_idx[:, None], rest], axis=1)   # (B, input_size)

    out = model(x)
    jax.block_until_ready(out)
    assert out.shape == (batch, output_size)

    # Pure-JAX reference of the same bf16-operand / f32-accumulate MLP path.
    idx = x[:, 0].astype(jnp.int32)
    emb_rows = jnp.take(model.emb, idx, axis=0).astype(jnp.float32)
    rest_bf = x[:, 1:].astype(jnp.bfloat16)
    h = (jnp.dot(emb_rows.astype(jnp.bfloat16), model.w1e,
                 preferred_element_type=jnp.float32)
         + jnp.dot(rest_bf, model.w1r, preferred_element_type=jnp.float32)
         + model.b1)
    h = jnp.maximum(h, 0.0)
    h = jnp.dot(h.astype(jnp.bfloat16), model.w2,
                preferred_element_type=jnp.float32) + model.b2
    h = jnp.maximum(h, 0.0)
    ref = (jnp.dot(h.astype(jnp.bfloat16), model.w3,
                   preferred_element_type=jnp.float32) + model.b3)[:, :output_size]
    assert jnp.allclose(out, ref, atol=1e-3, rtol=1e-3), \
        float(jnp.max(jnp.abs(out - ref)))

    # Also exercise the 1-D input branch.
    out1 = model(x[0])
    jax.block_until_ready(out1)
    assert out1.shape == (output_size,)
    assert jnp.allclose(out1, ref[0], atol=1e-3, rtol=1e-3)

    print("KERNEL_OK")
</pallas_src>

<mosaic_0001>
module attributes {stable_mosaic.version = 11 : i64} {
  func.func @_dqn_kernel(%arg0: i32, %arg1: memref<8x9xf32, #tpu.memory_space<vmem>>, %arg2: memref<384x24xbf16, #tpu.memory_space<vmem>>, %arg3: memref<24x32xbf16, #tpu.memory_space<vmem>>, %arg4: memref<8x32xbf16, #tpu.memory_space<vmem>>, %arg5: memref<1x32xf32, #tpu.memory_space<vmem>>, %arg6: memref<32x32xbf16, #tpu.memory_space<vmem>>, %arg7: memref<1x32xf32, #tpu.memory_space<vmem>>, %arg8: memref<32x128xbf16, #tpu.memory_space<vmem>>, %arg9: memref<1x128xf32, #tpu.memory_space<vmem>>, %arg10: memref<8x128xf32, #tpu.memory_space<vmem>>) attributes {dimension_semantics = [#tpu.dimension_semantics<parallel>], iteration_bounds = array<i64: 1>, scalar_prefetch = 0 : i64, scratch_operands = 0 : i64, tpu.core_type = #tpu.core_type<tc>, window_params = [{transform_indices = @transform_0, window_bounds = array<i64: 8, 9>}, {pipeline_mode = #tpu.pipeline_mode<synchronous>, transform_indices = @transform_1, window_bounds = array<i64: 384, 24>}, {pipeline_mode = #tpu.pipeline_mode<synchronous>, transform_indices = @transform_2, window_bounds = array<i64: 24, 32>}, {pipeline_mode = #tpu.pipeline_mode<synchronous>, transform_indices = @transform_3, window_bounds = array<i64: 8, 32>}, {pipeline_mode = #tpu.pipeline_mode<synchronous>, transform_indices = @transform_4, window_bounds = array<i64: 1, 32>}, {pipeline_mode = #tpu.pipeline_mode<synchronous>, transform_indices = @transform_5, window_bounds = array<i64: 32, 32>}, {pipeline_mode = #tpu.pipeline_mode<synchronous>, transform_indices = @transform_6, window_bounds = array<i64: 1, 32>}, {pipeline_mode = #tpu.pipeline_mode<synchronous>, transform_indices = @transform_7, window_bounds = array<i64: 32, 128>}, {pipeline_mode = #tpu.pipeline_mode<synchronous>, transform_indices = @transform_8, window_bounds = array<i64: 1, 128>}, {transform_indices = @transform_9, window_bounds = array<i64: 8, 128>}]} {
    %c0 = arith.constant 0 : index
    %c0_0 = arith.constant 0 : index
    %0 = vector.load %arg1[%c0, %c0_0] : memref<8x9xf32, #tpu.memory_space<vmem>>, vector<8x9xf32>
    %1 = vector.extract_strided_slice %0 {offsets = [0, 0], sizes = [8, 1], strides = [1, 1]} : vector<8x9xf32> to vector<8x1xf32>
    %2 = arith.fptosi %1 : vector<8x1xf32> to vector<8x1xi32>
    %3 = vector.extract_strided_slice %0 {offsets = [0, 1], sizes = [8, 8], strides = [1, 1]} : vector<8x9xf32> to vector<8x8xf32>
    %4 = arith.truncf %3 : vector<8x8xf32> to vector<8x8xbf16>
    %5 = tpu.iota {dimensions = array<i32: 1>} : vector<8x384xi32>
    %6 = vector.broadcast %2 : vector<8x1xi32> to vector<8x384xi32>
    %7 = arith.cmpi eq, %5, %6 : vector<8x384xi32>
    %8 = arith.extui %7 : vector<8x384xi1> to vector<8x384xi32>
    %9 = arith.sitofp %8 : vector<8x384xi32> to vector<8x384xf32>
    %10 = arith.truncf %9 : vector<8x384xf32> to vector<8x384xbf16>
    %c0_1 = arith.constant 0 : index
    %c0_2 = arith.constant 0 : index
    %11 = vector.load %arg2[%c0_1, %c0_2] : memref<384x24xbf16, #tpu.memory_space<vmem>>, vector<384x24xbf16>
    %cst = arith.constant dense<0.000000e+00> : vector<8x24xf32>
    %12 = tpu.matmul %10, %11, %cst {dimension_numbers = #tpu.dot_dimension_numbers<[1], [0], [0], [1], [0, 0, 1, 1], [], []>} : vector<8x384xbf16>, vector<384x24xbf16>, vector<8x24xf32> -> vector<8x24xf32>
    %13 = arith.truncf %12 : vector<8x24xf32> to vector<8x24xbf16>
    %c0_3 = arith.constant 0 : index
    %c0_4 = arith.constant 0 : index
    %14 = vector.load %arg3[%c0_3, %c0_4] : memref<24x32xbf16, #tpu.memory_space<vmem>>, vector<24x32xbf16>
    %cst_5 = arith.constant dense<0.000000e+00> : vector<8x32xf32>
    %15 = tpu.matmul %13, %14, %cst_5 {dimension_numbers = #tpu.dot_dimension_numbers<[1], [0], [0], [1], [0, 0, 1, 1], [], []>} : vector<8x24xbf16>, vector<24x32xbf16>, vector<8x32xf32> -> vector<8x32xf32>
    %c0_6 = arith.constant 0 : index
    %c0_7 = arith.constant 0 : index
    %16 = vector.load %arg4[%c0_6, %c0_7] : memref<8x32xbf16, #tpu.memory_space<vmem>>, vector<8x32xbf16>
    %cst_8 = arith.constant dense<0.000000e+00> : vector<8x32xf32>
    %17 = tpu.matmul %4, %16, %cst_8 {dimension_numbers = #tpu.dot_dimension_numbers<[1], [0], [0], [1], [0, 0, 1, 1], [], []>} : vector<8x8xbf16>, vector<8x32xbf16>, vector<8x32xf32> -> vector<8x32xf32>
    %18 = arith.addf %15, %17 : vector<8x32xf32>
    %c0_9 = arith.constant 0 : index
    %c0_10 = arith.constant 0 : index
    %19 = vector.load %arg5[%c0_9, %c0_10] : memref<1x32xf32, #tpu.memory_space<vmem>>, vector<1x32xf32>
    %20 = vector.broadcast %19 : vector<1x32xf32> to vector<8x32xf32>
    %21 = arith.addf %18, %20 : vector<8x32xf32>
    %cst_11 = arith.constant 0.000000e+00 : f32
    %22 = vector.broadcast %cst_11 : f32 to vector<8x32xf32>
    %23 = arith.maximumf %21, %22 : vector<8x32xf32>
    %24 = arith.truncf %23 : vector<8x32xf32> to vector<8x32xbf16>
    %c0_12 = arith.constant 0 : index
    %c0_13 = arith.constant 0 : index
    %25 = vector.load %arg6[%c0_12, %c0_13] : memref<32x32xbf16, #tpu.memory_space<vmem>>, vector<32x32xbf16>
    %cst_14 = arith.constant dense<0.000000e+00> : vector<8x32xf32>
    %26 = tpu.matmul %24, %25, %cst_14 {dimension_numbers = #tpu.dot_dimension_numbers<[1], [0], [0], [1], [0, 0, 1, 1], [], []>} : vector<8x32xbf16>, vector<32x32xbf16>, vector<8x32xf32> -> vector<8x32xf32>
    %c0_15 = arith.constant 0 : index
    %c0_16 = arith.constant 0 : index
    %27 = vector.load %arg7[%c0_15, %c0_16] : memref<1x32xf32, #tpu.memory_space<vmem>>, vector<1x32xf32>
    %28 = vector.broadcast %27 : vector<1x32xf32> to vector<8x32xf32>
    %29 = arith.addf %26, %28 : vector<8x32xf32>
    %cst_17 = arith.constant 0.000000e+00 : f32
    %30 = vector.broadcast %cst_17 : f32 to vector<8x32xf32>
    %31 = arith.maximumf %29, %30 : vector<8x32xf32>
    %32 = arith.truncf %31 : vector<8x32xf32> to vector<8x32xbf16>
    %c0_18 = arith.constant 0 : index
    %c0_19 = arith.constant 0 : index
    %33 = vector.load %arg8[%c0_18, %c0_19] : memref<32x128xbf16, #tpu.memory_space<vmem>>, vector<32x128xbf16>
    %cst_20 = arith.constant dense<0.000000e+00> : vector<8x128xf32>
    %34 = tpu.matmul %32, %33, %cst_20 {dimension_numbers = #tpu.dot_dimension_numbers<[1], [0], [0], [1], [0, 0, 1, 1], [], []>} : vector<8x32xbf16>, vector<32x128xbf16>, vector<8x128xf32> -> vector<8x128xf32>
    %c0_21 = arith.constant 0 : index
    %c0_22 = arith.constant 0 : index
    %35 = vector.load %arg9[%c0_21, %c0_22] : memref<1x128xf32, #tpu.memory_space<vmem>>, vector<1x128xf32>
    %36 = vector.broadcast %35 : vector<1x128xf32> to vector<8x128xf32>
    %37 = arith.addf %34, %36 : vector<8x128xf32>
    %c0_23 = arith.constant 0 : index
    %c0_24 = arith.constant 0 : index
    %38 = vector.load %arg10[%c0_23, %c0_24] : memref<8x128xf32, #tpu.memory_space<vmem>>, vector<8x128xf32>
    tpu.vector_store %arg10[%c0_23, %c0_24], %37 {strides = array<i32>} : memref<8x128xf32, #tpu.memory_space<vmem>>, vector<8x128xf32>,
    return
  }
  func.func @transform_0(%arg0: i32) -> (i32, i32) {
    %c0_i32 = arith.constant 0 : i32
    %c0_i32_0 = arith.constant 0 : i32
    return %arg0, %c0_i32 : i32, i32
  }
  func.func @transform_1(%arg0: i32) -> (i32, i32) {
    %c0_i32 = arith.constant 0 : i32
    %c0_i32_0 = arith.constant 0 : i32
    %c0_i32_1 = arith.constant 0 : i32
    return %c0_i32, %c0_i32_0 : i32, i32
  }
  func.func @transform_2(%arg0: i32) -> (i32, i32) {
    %c0_i32 = arith.constant 0 : i32
    %c0_i32_0 = arith.constant 0 : i32
    %c0_i32_1 = arith.constant 0 : i32
    return %c0_i32, %c0_i32_0 : i32, i32
  }
  func.func @transform_3(%arg0: i32) -> (i32, i32) {
    %c0_i32 = arith.constant 0 : i32
    %c0_i32_0 = arith.constant 0 : i32
    %c0_i32_1 = arith.constant 0 : i32
    return %c0_i32, %c0_i32_0 : i32, i32
  }
  func.func @transform_4(%arg0: i32) -> (i32, i32) {
    %c0_i32 = arith.constant 0 : i32
    %c0_i32_0 = arith.constant 0 : i32
    %c0_i32_1 = arith.constant 0 : i32
    return %c0_i32, %c0_i32_0 : i32, i32
  }
  func.func @transform_5(%arg0: i32) -> (i32, i32) {
    %c0_i32 = arith.constant 0 : i32
    %c0_i32_0 = arith.constant 0 : i32
    %c0_i32_1 = arith.constant 0 : i32
    return %c0_i32, %c0_i32_0 : i32, i32
  }
  func.func @transform_6(%arg0: i32) -> (i32, i32) {
    %c0_i32 = arith.constant 0 : i32
    %c0_i32_0 = arith.constant 0 : i32
    %c0_i32_1 = arith.constant 0 : i32
    return %c0_i32, %c0_i32_0 : i32, i32
  }
  func.func @transform_7(%arg0: i32) -> (i32, i32) {
    %c0_i32 = arith.constant 0 : i32
    %c0_i32_0 = arith.constant 0 : i32
    %c0_i32_1 = arith.constant 0 : i32
    return %c0_i32, %c0_i32_0 : i32, i32
  }
  func.func @transform_8(%arg0: i32) -> (i32, i32) {
    %c0_i32 = arith.constant 0 : i32
    %c0_i32_0 = arith.constant 0 : i32
    %c0_i32_1 = arith.constant 0 : i32
    return %c0_i32, %c0_i32_0 : i32, i32
  }
  func.func @transform_9(%arg0: i32) -> (i32, i32) {
    %c0_i32 = arith.constant 0 : i32
    %c0_i32_0 = arith.constant 0 : i32
    return %arg0, %c0_i32 : i32, i32
  }
}

</mosaic_0001>

<bundles_post_ra>
// kernel: dqn_forward.1
= control target key start
LH: loop header
LB: loop body
LE: loop exit
PB: predicated region body
PF: predicated region fallthrough
CT: control target
= control target key end

     0   :  { %v799_v2 = vmov 0   ;;  %v800_v4 = vmov 0.0   ;;  %vm801_vm0 = vmmov 0   ;;  %s802_s30 = smov 127   ;;  %s988_s0 = inlined_call_operand.vmem [shape: f32[8,9], index: 0, kind: input, shape index: {}]   ;;  %s989_s1 = inlined_call_operand.vmem [shape: bf16[384,24], index: 1, kind: input, shape index: {}]   ;;  %s990_s2 = inlined_call_operand.vmem [shape: bf16[24,32], index: 2, kind: input, shape index: {}]   ;;  %s991_s3 = inlined_call_operand.vmem [shape: bf16[8,32], index: 3, kind: input, shape index: {}]   ;;  %s992_s4 = inlined_call_operand.vmem [shape: f32[1,32], index: 4, kind: input, shape index: {}]   ;;  %s993_s5 = inlined_call_operand.vmem [shape: bf16[32,32], index: 5, kind: input, shape index: {}]   ;;  %s994_s6 = inlined_call_operand.vmem [shape: f32[1,32], index: 6, kind: input, shape index: {}]   ;;  %s995_s7 = inlined_call_operand.vmem [shape: bf16[32,128], index: 7, kind: input, shape index: {}]   ;;  %s996_s8 = inlined_call_operand.vmem [shape: f32[1,128], index: 8, kind: input, shape index: {}]   ;;  %s997_s9 = inlined_call_operand.hbm [shape: f32[8,128], index: 9, kind: output, shape index: {}]  }
   0x1   :  { %v34_v0 = vld [vmem:[%s988_s0] sm:$0xff]  ;;  %v747_v1 = vld [vmem:[%s989_s1 + $0x78] sm:$0xff]   ;;  %746 = vset.pattern.permute.xlu0 %v799_v2  ;;  %688 = vmatprep.subr.bf16.mxu1 %v800_v4  ;;  %v750_v8 = vld [vmem:[%s989_s1 + $0x70] sm:$0xff]  }
   0x2   :  { %v738_v3 = vtrunc.f32 %v34_v0  ;;  %646 = vmatprep.subr.bf16.mxu0 %v747_v1  ;;  %v748_v5 = vld [vmem:[%s989_s1 + $0xb8] sm:$0xff]   ;;  %704 = vmatprep.mubr.msk.bf16.mxu1 %vm801_vm0, %v800_v4  ;;  %v751_v9 = vld [vmem:[%s989_s1 + $0xb0] sm:$0xff]   ;;  %v36_v11 = vpack.c.bf16 %v34_v0, %v34_v0  ;;  %v753_v12 = vld [vmem:[%s989_s1 + $0x68] sm:$0xff]  }
   0x3   :  { %v749_v7 = vld [vmem:[%s989_s1 + $0x38] sm:$0xff]   ;;  %689 = vmatpush3.bf16.msra.mxu1 %v748_v5  ;;  %v752_v10 = vld [vmem:[%s989_s1 + $0x30] sm:$0xff]   ;;  %v754_v13 = vld [vmem:[%s989_s1 + $0xa8] sm:$0xff]  }
   0x4   :  { %v739_v6 = vcvt.f32.s32 %v738_v3  ;;  %647 = vmatpush3.bf16.msra.mxu0 %v749_v7  ;;  %690 = vmatprep.subr.bf16.mxu1 %v800_v4  ;;  %v755_v14 = vld [vmem:[%s989_s1 + $0x28] sm:$0xff]   ;;  %v756_v15 = vld [vmem:[%s989_s1 + $0x60] sm:$0xff]   ;;  %v759_v18 = vld [vmem:[%s989_s1 + $0x58] sm:$0xff]  }
   0x5   :  { %648 = vmatprep.subr.bf16.mxu0 %v750_v8  ;;  %v757_v16 = vld [vmem:[%s989_s1 + $0xa0] sm:$0xff]   ;;  %v760_v19 = vld [vmem:[%s989_s1 + $0x98] sm:$0xff]   ;;  %v762_v21 = vld [vmem:[%s989_s1 + $0x50] sm:$0xff]  }
   0x6   :  { %42 = vperm.xlu0 %746, %v739_v6   ;;  %v758_v17 = vld [vmem:[%s989_s1 + $0x20] sm:$0xff]   ;;  %v761_v20 = vld [vmem:[%s989_s1 + $0x18] sm:$0xff]   ;;  %v763_v22 = vld [vmem:[%s989_s1 + $0x90] sm:$0xff]  }
   0x7   :  { %691 = vmatpush3.bf16.msra.mxu1 %v751_v9  ;;  %v764_v23 = vld [vmem:[%s989_s1 + $0x10] sm:$0xff]   ;;  %v765_v24 = vld [vmem:[%s989_s1 + $0x48] sm:$0xff]   ;;  %v768_v27 = vld [vmem:[%s989_s1 + $0x40] sm:$0xff]  }
   0x8   :  { %649 = vmatpush3.bf16.msra.mxu0 %v752_v10  ;;  %692 = vmatprep.subr.bf16.mxu1 %v800_v4  ;;  %v766_v25 = vld [vmem:[%s989_s1 + $0x88] sm:$0xff]   ;;  %v769_v28 = vld [vmem:[%s989_s1 + $0x80] sm:$0xff]  }
   0x9   :  { %650 = vmatprep.subr.bf16.mxu0 %v753_v12  ;;  %v767_v26 = vld [vmem:[%s989_s1 + $0x8] sm:$0xff]  }
   0xa   :  { %334 = vrot.lane.b32.xlu0 %v36_v11, %s802_s30 }
   0xb   :  { %693 = vmatpush3.bf16.msra.mxu1 %v754_v13 }
   0xc   :  { %651 = vmatpush3.bf16.msra.mxu0 %v755_v14  ;;  %694 = vmatprep.subr.bf16.mxu1 %v800_v4 }
   0xd   :  { %652 = vmatprep.subr.bf16.mxu0 %v756_v15 }
   0xf   :  { %695 = vmatpush3.bf16.msra.mxu1 %v757_v16 }
  0x10   :  { %653 = vmatpush3.bf16.msra.mxu0 %v758_v17  ;;  %696 = vmatprep.subr.bf16.mxu1 %v800_v4 }
  0x11   :  { %654 = vmatprep.subr.bf16.mxu0 %v759_v18 }
  0x13   :  { %697 = vmatpush3.bf16.msra.mxu1 %v760_v19 }
  0x14   :  { %655 = vmatpush3.bf16.msra.mxu0 %v761_v20  ;;  %698 = vmatprep.subr.bf16.mxu1 %v800_v4 }
  0x15   :  { %656 = vmatprep.subr.bf16.mxu0 %v762_v21 }
  0x17   :  { %699 = vmatpush3.bf16.msra.mxu1 %v763_v22 }
  0x18   :  { %657 = vmatpush3.bf16.msra.mxu0 %v764_v23  ;;  %700 = vmatprep.subr.bf16.mxu1 %v800_v4 }
  0x19   :  { %658 = vmatprep.subr.bf16.mxu0 %v765_v24 }
  0x1b   :  { %701 = vmatpush3.bf16.msra.mxu1 %v766_v25 }
  0x1c   :  { %14 = vsyncpa [#allocation3], 0  ;;  %659 = vmatpush3.bf16.msra.mxu0 %v767_v26  ;;  %702 = vmatprep.subr.bf16.mxu1 %v800_v4  ;;  %v770_v29 = vld [vmem:[%s989_s1] sm:$0xff]   ;;  %v37_v30 = vlaneseq  ;;  %v803_v35 = vmov 1.0|1.0   ;;  %vm340_vm7 = vcmask 1043456  }
  0x1d   :  { %660 = vmatprep.subr.bf16.mxu0 %v768_v27  ;;  %v332_v36 = vld [vmem:[%s991_s3] sm:$0xf]  ;;  %v771_v38 = vld [vmem:[%s990_s2 + $0x8] ss:$0 sps:$4 sm:$0xff]   ;;  %vm336_vm8 = vcmask 64512   ;;  %vm393_vm9 = vcmask 195584  }
  0x1e   :  { %v38_v31 = vand.u32 127, %v37_v30  ;;  %v342_v37 = vsel %vm340_vm7, %v332_v36, 0  ;;  %v398_v39 = vsel %vm340_vm7, %v771_v38, 0  ;;  %v772_v41 = vld [vmem:[%s990_s2] sm:$0xff]   ;;  %v773_v57 = vld [vmem:[%s993_s5 + $0x8] sm:$0xff]   ;;  %vm473_vm10 = vcmask 261120  }
  0x1f   :  { %703 = vmatpush3.bf16.msra.mxu1 %v769_v28  ;;  %v774_v58 = vld [vmem:[%s993_s5] sm:$0xff]   ;;  %v775_v59 = vld [vmem:[%s995_s7 + $0x8] sm:$0xff]   ;;  %s804_s30 = smov [#allocation2]  }
  0x20   :  { %661 = vmatpush3.bf16.msra.mxu0 %v770_v29  ;;  %714 = vmatprep.subr.bf16.mxu1 %v800_v4  ;;  %v40_v32 = vadd.s32 256, %v38_v31  ;;  %v39_v33 = vadd.s32 128, %v38_v31  ;;  %v637_v61 = vld [vmem:[%s992_s4] ss:$0 sm:$0xff]  ;;  %s592_s10 = sshll.u32 %s804_s30, 4  ;;  %s593_s10 = int_to_ptr.vmem [resolvable:$true] %s592_s10 }
  0x21   :  { %708 = vmatprep.subr.bf16.mxu0 %v800_v4  ;;  %v776_v6 = vld [vmem:[%s995_s7] sm:$0xff]   ;;  %p782_p1 = scmp.lt.s32.totalorder %s593_s10, %s593_s10 }
  0x22   :  { %v642_v14 = vld [vmem:[%s996_s8] ss:$0 sm:$0xff] }
  0x81   :  { %v43_v34 = vpop.permute.xlu0 %42 }
  0x82   :  { %vm44_vm1 = vcmp.eq.s32.totalorder %v38_v31, %v43_v34  ;;  %vm46_vm2 = vcmp.eq.s32.totalorder %v40_v32, %v43_v34  ;;  %vm45_vm3 = vcmp.eq.s32.totalorder %v39_v33, %v43_v34 }
  0x83   :  { %vm627_vm4 = vmpackc.low %vm45_vm3, %vm45_vm3 }
  0x84   :  { %628 = vmatprep.mubr.msk.bf16.mxu0 %vm627_vm4, %v803_v35  ;;  %vm631_vm5 = vmpackc.low %vm46_vm2, %vm46_vm2 }
  0x85   :  { %705 = vmatmul.mubr.msk.bf16.vlgmr.msra.gmra.mxu1 %vm631_vm5, %v803_v35  ;;  %vm629_vm6 = vmpackc.low %vm44_vm1, %vm44_vm1  ;;  %v335_v40 = vpop.permute.xlu0 %334 }
  0x86   :  { %630 = vmatmul.mubr.msk.bf16.vlgmr.msra.gmra.mxu0 %vm629_vm6, %v803_v35  ;;  %718 = vmatprep.mubr.msk.bf16.mxu1 %vm801_vm0, %v800_v4 }
  0x87   :  { %710 = vmatprep.mubr.msk.bf16.mxu0 %vm801_vm0, %v800_v4  ;;  %709 = vmatpush3.bf16.msra.mxu0 %v342_v37 }
  0x88   :  { %722 = vmatprep.subr.bf16.mxu0 %v800_v4  ;;  %715 = vmatpush3.bf16.msra.mxu1 %v398_v39 }
  0x89   :  { %716 = vmatprep.subr.bf16.mxu1 %v800_v4 }
  0x8c   :  { %717 = vmatpush3.bf16.msra.mxu1 %v772_v41 }
  0x8d   :  { %730 = vmatprep.subr.bf16.mxu1 %v800_v4 }
  0x8e   :  { %711 = vmatmul.mubr.msk.bf16.vlgmr.msra.gmra.mxu0 %vm336_vm8, %v335_v40 }
  0x8f   :  { %726 = vmatprep.mubr.msk.bf16.mxu0 %vm801_vm0, %v800_v4  ;;  %723 = vmatpush3.bf16.msra.mxu0 %v773_v57 }
  0x90   :  { %724 = vmatprep.subr.bf16.mxu0 %v800_v4 }
  0x93   :  { %725 = vmatpush3.bf16.msra.mxu0 %v774_v58 }
 0x145   :  { %v322_v42 = vpop.f32.mrf.mxu1 }
 0x146   :  { %v662_v43 = vpop.f32.mrf.mxu0 }
 0x147   :  { %v706_v44 = vpop.f32.mrf.mxu1 }
 0x148   :  { %v663_v45 = vpop.f32.mrf.mxu0 }
 0x149   :  { %v664_v46 = vadd.f32 %v663_v45, %v662_v43  ;;  %v325_v47 = vpop.f32.mrf.mxu1 }
 0x14a   :  { %v665_v48 = vpop.f32.mrf.mxu0 }
 0x14b   :  { %v323_v49 = vadd.f32 %v664_v46, %v322_v42  ;;  %v707_v50 = vpop.f32.mrf.mxu1 }
 0x14c   :  { %v666_v51 = vpop.f32.mrf.mxu0 }
 0x14d   :  { %v328_v52 = vpack.c.bf16 %v323_v49, %v323_v49 }
 0x14e   :  { %v378_v53 = vpop.f32.mrf.mxu0 }
 0x14f   :  { %719 = vmatmul.mubr.msk.bf16.vlgmr.msra.gmra.mxu1 %vm393_vm9, %v328_v52 }
 0x150   :  { %734 = vmatprep.mubr.msk.bf16.mxu1 %vm801_vm0, %v800_v4  ;;  %v712_v54 = vpop.f32.mrf.mxu0  ;;  %731 = vmatpush3.bf16.msra.mxu1 %v775_v59 }
 0x151   :  { %732 = vmatprep.subr.bf16.mxu1 %v800_v4  ;;  %v638_v4 = vld [vmem:[%s994_s6] ss:$0 sm:$0xff]  ;;  %s777_s6 = scalar_lea.vmem %s593_s10, 128 }
 0x152   :  { %v381_v55 = vpop.f32.mrf.mxu0  ;;  %p778_p0 = scmp.ne.s32.totalorder %s593_s10, %s777_s6  ;;  %p783_p2 = scmp.lt.s32.totalorder %s777_s6, %s777_s6 }
 0x154   :  { %v713_v56 = vpop.f32.mrf.mxu0  ;;  %733 = vmatpush3.bf16.msra.mxu1 %v776_v6  ;;  %p784_p3 = por %p783_p2, %p782_p1 }
 0x156   :  { %p785_p4 = pnand %p784_p3, %p778_p0 }
 0x20f   :  { %v434_v60 = vpop.f32.mrf.mxu1 }
 0x210   :  { %v435_v62 = vadd.f32 %v434_v60, %v378_v53 }
 0x211   :  { %v720_v63 = vpop.f32.mrf.mxu1 }
 0x212   :  { %v447_v0 = vadd.f32 %v637_v61, %v435_v62 }
 0x213   :  { %v437_v1 = vpop.f32.mrf.mxu1 }
 0x214   :  { %v448_v2 = vmax.f32 %v447_v0, 0.0 }
 0x215   :  { %v721_v3 = vpop.f32.mrf.mxu1 }
 0x216   :  { %v449_v5 = vpack.c.bf16 %v448_v2, %v448_v2 }
 0x218   :  { %727 = vmatmul.mubr.msk.bf16.vlgmr.msra.gmra.mxu0 %vm473_vm10, %v449_v5 }
 0x2d8   :  { %v511_v7 = vpop.f32.mrf.mxu0 }
 0x2d9   :  { %v512_v8 = vadd.f32 %v638_v4, %v511_v7 }
 0x2da   :  { %v728_v9 = vpop.f32.mrf.mxu0 }
 0x2db   :  { %v517_v10 = vmax.f32 %v512_v8, 0.0 }
 0x2dc   :  { %v514_v11 = vpop.f32.mrf.mxu0 }
 0x2dd   :  { %v518_v12 = vpack.c.bf16 %v517_v10, %v517_v10 }
 0x2de   :  { %v729_v13 = vpop.f32.mrf.mxu0 }
 0x2df   :  { %735 = vmatmul.mubr.msk.bf16.vlgmr.msra.gmra.mxu1 %vm473_vm10, %v518_v12 }
 0x39f   :  { %v579_v15 = vpop.f32.mrf.mxu1 }
 0x3a0   :  { %v580_v16 = vadd.f32 %v642_v14, %v579_v15 }
 0x3a1   :  { %v736_v17 = vpop.f32.mrf.mxu1 }
 0x3a2   :  { %585 = vst [vmem:[#allocation2] sm:$0xff] %v580_v16 }
 0x3a3   :  { %v582_v18 = vpop.f32.mrf.mxu1 }
 0x3a4   :  { %788 = shalt.err (!%p785_p4)
}
 0x3a5   :  { %595 = dma.vmem_to_hbm [thread:$0]  %s593_s10, 128, %s997_s9, [#allocation3]   ;;  %v737_v19 = vpop.f32.mrf.mxu1 }
 0x3a6   :  { %797 = dma.done.wait [#allocation3], 128  }
 0x3a7   :  { %798 = vsyncadd [#allocation3], 4294967168 }
 0x3a8   :  { %599 = vsyncpa [#allocation3], 1 }

</bundles_post_ra>
